<compile_context>
chip_gen: v7x
topology: tpu7x:2x2x1
jax: 0.10.0
libtpu: 0.0.40
codegen_flags: <defaults>
</compile_context>

<pallas_src>
import functools

import jax
import jax.numpy as jnp
import numpy as np
from jax.experimental import pallas as pl
from jax.experimental.pallas import tpu as pltpu

_NEG_INF = float(np.finfo(np.float32).min)


def _ceil_to(x: int, m: int) -> int:
    return ((x + m - 1) // m) * m


def _pick_tile(dim_pad: int, candidates) -> int:
    for c in candidates:
        if dim_pad % c == 0:
            return c
    return dim_pad


# ---------------------------------------------------------------------------
# Fused matmul + bias + (optional) ReLU  — the conv workhorse (MXU).
# ---------------------------------------------------------------------------
def _mm_bias_act_kernel(a_ref, b_ref, bias_ref, o_ref, acc_ref, *, relu):
    @pl.when(pl.program_id(2) == 0)
    def _():
        acc_ref[...] = jnp.zeros_like(acc_ref)

    acc_ref[...] += jnp.dot(a_ref[...], b_ref[...],
                            preferred_element_type=jnp.float32)

    @pl.when(pl.program_id(2) == pl.num_programs(2) - 1)
    def _():
        y = acc_ref[...] + bias_ref[...].astype(jnp.float32)
        if relu:
            y = jnp.maximum(y, 0.0)
        o_ref[...] = y.astype(o_ref.dtype)


def matmul_bias_act(a, b, bias, *, relu):
    """relu(a @ b + bias).  a: (M, K), b: (K, N), bias: (N,) — all f32."""
    M, K = a.shape
    K2, N = b.shape
    assert K == K2 and bias.shape == (N,)

    K_pad = _ceil_to(K, 128)
    tk = _pick_tile(K_pad, (512, 384, 256, 128))
    N_pad = _ceil_to(N, 128)
    tn = _pick_tile(N_pad, (512, 256, 128))
    tm = 256 if M >= 256 else _ceil_to(M, 8)
    M_pad = _ceil_to(M, tm)

    if (M_pad, K_pad) != (M, K):
        a = jnp.pad(a, ((0, M_pad - M), (0, K_pad - K)))
    if (K_pad, N_pad) != (K, N):
        b = jnp.pad(b, ((0, K_pad - K), (0, N_pad - N)))
    if N_pad != N:
        bias = jnp.pad(bias, (0, N_pad - N))
    bias2 = bias.reshape(1, N_pad)

    grid = (M_pad // tm, N_pad // tn, K_pad // tk)
    out = pl.pallas_call(
        functools.partial(_mm_bias_act_kernel, relu=relu),
        out_shape=jax.ShapeDtypeStruct((M_pad, N_pad), a.dtype),
        grid_spec=pltpu.PrefetchScalarGridSpec(
            num_scalar_prefetch=0,
            grid=grid,
            in_specs=[
                pl.BlockSpec((tm, tk), lambda i, j, k: (i, k)),
                pl.BlockSpec((tk, tn), lambda i, j, k: (k, j)),
                pl.BlockSpec((1, tn), lambda i, j, k: (0, j)),
            ],
            out_specs=pl.BlockSpec((tm, tn), lambda i, j, k: (i, j)),
            scratch_shapes=[pltpu.VMEM((tm, tn), jnp.float32)],
        ),
        compiler_params=pltpu.CompilerParams(
            dimension_semantics=("parallel", "parallel", "arbitrary")),
    )(a, b, bias2)

    if (M_pad, N_pad) != (M, N):
        out = out[:M, :N]
    return out


# ---------------------------------------------------------------------------
# Conv2d + folded BN + ReLU  (im2col in the wrapper, matmul in Pallas).
# ---------------------------------------------------------------------------
def conv_bn_relu(x, p, *, ksize, stride=(1, 1), padding=(0, 0)):
    """x: (N, H, W, Cin) f32 NHWC.  p: {'w': (KH*KW*Cin, Cout), 'b': (Cout,)}."""
    N, H, W, Cin = x.shape
    KH, KW = ksize
    SH, SW = stride
    PH, PW = padding
    if PH or PW:
        x = jnp.pad(x, ((0, 0), (PH, PH), (PW, PW), (0, 0)))
    Hp, Wp = H + 2 * PH, W + 2 * PW
    Ho = (Hp - KH) // SH + 1
    Wo = (Wp - KW) // SW + 1

    if KH == 1 and KW == 1 and SH == 1 and SW == 1:
        patches = x
        K = Cin
    else:
        cols = []
        for kh in range(KH):
            for kw in range(KW):
                cols.append(x[:, kh:kh + SH * (Ho - 1) + 1:SH,
                              kw:kw + SW * (Wo - 1) + 1:SW, :])
        patches = jnp.concatenate(cols, axis=-1)   # (N, Ho, Wo, KH*KW*Cin)
        K = KH * KW * Cin

    a = patches.reshape(N * Ho * Wo, K)
    out = matmul_bias_act(a, p["w"], p["b"], relu=True)
    return out.reshape(N, Ho, Wo, -1)


# ---------------------------------------------------------------------------
# 3x3 pooling kernels (stride-1 window reduce over row chunks with a halo).
# ---------------------------------------------------------------------------
def _max_pool3x3_s1_kernel(x_ref, o_ref):
    x = x_ref[...]                                  # (TR+2, Wi, C)
    tr2, wi, _ = x.shape
    tr, wo = tr2 - 2, wi - 2
    t = jnp.maximum(jnp.maximum(x[:, 0:wo, :], x[:, 1:wo + 1, :]), x[:, 2:wo + 2, :])
    o_ref[...] = jnp.maximum(jnp.maximum(t[0:tr], t[1:tr + 1]), t[2:tr + 2]).astype(o_ref.dtype)


def _avg_pool3x3_s1_kernel(x_ref, inv_ref, o_ref):
    x = x_ref[...].astype(jnp.float32)              # (TR+2, Wi, C)
    tr2, wi, _ = x.shape
    tr, wo = tr2 - 2, wi - 2
    t = x[:, 0:wo, :] + x[:, 1:wo + 1, :] + x[:, 2:wo + 2, :]
    s = t[0:tr] + t[1:tr + 1] + t[2:tr + 2]
    o_ref[...] = (s * inv_ref[...]).astype(o_ref.dtype)   # inv: (TR, Wo, 1)


def pool3x3(x, *, stride=1, padding=0, op="max", block_bytes=2 << 20):
    """3x3 pool over NHWC x.  op='max' -> max_pool2d;  op='avg' -> avg_pool2d with
    count_include_pad=False (FID blocks).  stride in {1, 2}."""
    assert op in ("max", "avg") and stride in (1, 2)
    N, H, W, C = x.shape
    dtype = x.dtype
    pad_val = _NEG_INF if op == "max" else 0.0
    if padding:
        x = jnp.pad(x, ((0, 0), (padding, padding), (padding, padding), (0, 0)),
                    constant_values=pad_val)
    Hi, Wi = H + 2 * padding, W + 2 * padding
    Ho1, Wo1 = Hi - 2, Wi - 2                       # stride-1 output size

    row_bytes = Wi * C * x.dtype.itemsize
    TR = max(1, min(Ho1, int(block_bytes // row_bytes)))
    nblk = -(-Ho1 // TR)
    Ho1_pad = nblk * TR
    extra = Ho1_pad + 2 - Hi
    if extra > 0:                                   # only affects cropped rows
        x = jnp.pad(x, ((0, 0), (0, extra), (0, 0), (0, 0)), constant_values=pad_val)
    xc = jnp.stack([x[:, b * TR: b * TR + TR + 2] for b in range(nblk)], axis=1)
    # xc: (N, nblk, TR+2, Wi, C)

    in_specs = [pl.BlockSpec((None, None, TR + 2, Wi, C),
                             lambda n, b: (n, b, 0, 0, 0))]
    args = [xc]
    if op == "avg":
        if padding:
            r = np.arange(Ho1)
            c = np.arange(Wo1)
            ch = np.minimum(r, 1) + 1 + np.minimum(Ho1 - 1 - r, 1)
            cw = np.minimum(c, 1) + 1 + np.minimum(Wo1 - 1 - c, 1)
            cnt = ch[:, None] * cw[None, :]
        else:
            cnt = np.full((Ho1, Wo1), 9.0)
        inv = (1.0 / cnt).astype(np.float32)
        inv = np.pad(inv, ((0, Ho1_pad - Ho1), (0, 0)), constant_values=1.0)
        inv = np.stack([inv[b * TR:(b + 1) * TR] for b in range(nblk)], axis=0)[..., None]
        in_specs.append(pl.BlockSpec((None, TR, Wo1, 1), lambda n, b: (b, 0, 0, 0)))
        args.append(jnp.asarray(inv))
        kernel = _avg_pool3x3_s1_kernel
    else:
        kernel = _max_pool3x3_s1_kernel

    out = pl.pallas_call(
        kernel,
        out_shape=jax.ShapeDtypeStruct((N, nblk, TR, Wo1, C), dtype),
        grid_spec=pltpu.PrefetchScalarGridSpec(
            num_scalar_prefetch=0,
            grid=(N, nblk),
            in_specs=in_specs,
            out_specs=pl.BlockSpec((None, None, TR, Wo1, C),
                                   lambda n, b: (n, b, 0, 0, 0)),
        ),
        compiler_params=pltpu.CompilerParams(
            dimension_semantics=("parallel", "parallel")),
    )(*args)

    out = out.reshape(N, Ho1_pad, Wo1, C)[:, :Ho1]
    if stride == 2:
        out = out[:, ::2, ::2, :]
    return out


# ---------------------------------------------------------------------------
# Global average pool (AdaptiveAvgPool2d((1,1))).
# ---------------------------------------------------------------------------
def _gap_kernel(x_ref, o_ref):
    o_ref[...] = jnp.mean(x_ref[...].astype(jnp.float32), axis=0,
                          keepdims=True).astype(o_ref.dtype)


def global_avg_pool(x):
    N, H, W, C = x.shape
    x2 = x.reshape(N, H * W, C)
    out = pl.pallas_call(
        _gap_kernel,
        out_shape=jax.ShapeDtypeStruct((N, 1, C), x.dtype),
        grid_spec=pltpu.PrefetchScalarGridSpec(
            num_scalar_prefetch=0,
            grid=(N,),
            in_specs=[pl.BlockSpec((None, H * W, C), lambda n: (n, 0, 0))],
            out_specs=pl.BlockSpec((None, 1, C), lambda n: (n, 0, 0)),
        ),
        compiler_params=pltpu.CompilerParams(dimension_semantics=("parallel",)),
    )(x2)
    return out.reshape(N, 1, 1, C)


# ---------------------------------------------------------------------------
# Bilinear resize to 299x299 (align_corners=False) as two Pallas matmuls;
# the (0,1)->(-1,1) normalization is folded into the second matmul.
# ---------------------------------------------------------------------------
def _bilinear_matrix(out_size, in_size):
    A = np.zeros((out_size, in_size), np.float32)
    scale = in_size / out_size
    for i in range(out_size):
        src = max((i + 0.5) * scale - 0.5, 0.0)
        i0 = min(int(np.floor(src)), in_size - 1)
        i1 = min(i0 + 1, in_size - 1)
        w1 = src - i0
        A[i, i0] += 1.0 - w1
        A[i, i1] += w1
    return A


def bilinear_resize_299(x, *, normalize):
    N, C, H, W = x.shape
    Aw = jnp.asarray(_bilinear_matrix(299, W))      # (299, W)
    Ah = jnp.asarray(_bilinear_matrix(299, H))      # (299, H)
    # resize along W
    y = matmul_bias_act(x.reshape(N * C * H, W), Aw.T,
                        jnp.zeros((299,), jnp.float32), relu=False)
    y = y.reshape(N, C, H, 299)
    # resize along H; fold 2*x - 1 into this matmul if requested
    y = jnp.transpose(y, (0, 1, 3, 2)).reshape(N * C * 299, H)
    scale = 2.0 if normalize else 1.0
    shift = -1.0 if normalize else 0.0
    y = matmul_bias_act(y, Ah.T * scale,
                        jnp.full((299,), shift, jnp.float32), relu=False)
    y = y.reshape(N, C, 299, 299)                   # (N, C, Wout, Hout)
    return jnp.transpose(y, (0, 1, 3, 2))           # (N, C, Hout, Wout)


# ---------------------------------------------------------------------------
# Parameters (deterministic random; BN folded into the conv).
# ---------------------------------------------------------------------------
class _KeyGen:
    def __init__(self, key):
        self.key = key
        self.i = 0

    def __call__(self):
        k = jax.random.fold_in(self.key, self.i)
        self.i += 1
        return k


def _basic_conv_params(key, cin, cout, ksize, eps=1e-3):
    KH, KW = ksize
    k1, k2, k3, k4, k5 = jax.random.split(key, 5)
    fan_in = cin * KH * KW
    w = jax.random.normal(k1, (cout, cin, KH, KW), jnp.float32) * np.sqrt(2.0 / fan_in)
    gamma = 1.0 + 0.1 * jax.random.normal(k2, (cout,), jnp.float32)
    beta = 0.1 * jax.random.normal(k3, (cout,), jnp.float32)
    mean = 0.1 * jax.random.normal(k4, (cout,), jnp.float32)
    var = jax.random.uniform(k5, (cout,), jnp.float32, minval=0.5, maxval=1.5)
    scale = gamma / jnp.sqrt(var + eps)
    bias = beta - mean * scale
    wmat = jnp.transpose(w, (2, 3, 1, 0)).reshape(KH * KW * cin, cout) * scale[None, :]
    return {"w": wmat, "b": bias}


def _init_inception_a(kg, cin, pool_features):
    return {
        "b1x1": _basic_conv_params(kg(), cin, 64, (1, 1)),
        "b5x5_1": _basic_conv_params(kg(), cin, 48, (1, 1)),
        "b5x5_2": _basic_conv_params(kg(), 48, 64, (5, 5)),
        "b3x3dbl_1": _basic_conv_params(kg(), cin, 64, (1, 1)),
        "b3x3dbl_2": _basic_conv_params(kg(), 64, 96, (3, 3)),
        "b3x3dbl_3": _basic_conv_params(kg(), 96, 96, (3, 3)),
        "pool": _basic_conv_params(kg(), cin, pool_features, (1, 1)),
    }


def _apply_inception_a(x, p):
    b1 = conv_bn_relu(x, p["b1x1"], ksize=(1, 1))
    b5 = conv_bn_relu(x, p["b5x5_1"], ksize=(1, 1))
    b5 = conv_bn_relu(b5, p["b5x5_2"], ksize=(5, 5), padding=(2, 2))
    bd = conv_bn_relu(x, p["b3x3dbl_1"], ksize=(1, 1))
    bd = conv_bn_relu(bd, p["b3x3dbl_2"], ksize=(3, 3), padding=(1, 1))
    bd = conv_bn_relu(bd, p["b3x3dbl_3"], ksize=(3, 3), padding=(1, 1))
    bp = pool3x3(x, stride=1, padding=1, op="avg")      # count_include_pad=False (FID)
    bp = conv_bn_relu(bp, p["pool"], ksize=(1, 1))
    return jnp.concatenate([b1, b5, bd, bp], axis=-1)


def _init_inception_b(kg, cin):
    return {
        "b3x3": _basic_conv_params(kg(), cin, 384, (3, 3)),
        "b3x3dbl_1": _basic_conv_params(kg(), cin, 64, (1, 1)),
        "b3x3dbl_2": _basic_conv_params(kg(), 64, 96, (3, 3)),
        "b3x3dbl_3": _basic_conv_params(kg(), 96, 96, (3, 3)),
    }


def _apply_inception_b(x, p):
    b3 = conv_bn_relu(x, p["b3x3"], ksize=(3, 3), stride=(2, 2))
    bd = conv_bn_relu(x, p["b3x3dbl_1"], ksize=(1, 1))
    bd = conv_bn_relu(bd, p["b3x3dbl_2"], ksize=(3, 3), padding=(1, 1))
    bd = conv_bn_relu(bd, p["b3x3dbl_3"], ksize=(3, 3), stride=(2, 2))
    bp = pool3x3(x, stride=2, padding=0, op="max")
    return jnp.concatenate([b3, bd, bp], axis=-1)


def _init_inception_c(kg, cin, c7):
    return {
        "b1x1": _basic_conv_params(kg(), cin, 192, (1, 1)),
        "b7x7_1": _basic_conv_params(kg(), cin, c7, (1, 1)),
        "b7x7_2": _basic_conv_params(kg(), c7, c7, (1, 7)),
        "b7x7_3": _basic_conv_params(kg(), c7, 192, (7, 1)),
        "b7x7dbl_1": _basic_conv_params(kg(), cin, c7, (1, 1)),
        "b7x7dbl_2": _basic_conv_params(kg(), c7, c7, (7, 1)),
        "b7x7dbl_3": _basic_conv_params(kg(), c7, c7, (1, 7)),
        "b7x7dbl_4": _basic_conv_params(kg(), c7, c7, (7, 1)),
        "b7x7dbl_5": _basic_conv_params(kg(), c7, 192, (1, 7)),
        "pool": _basic_conv_params(kg(), cin, 192, (1, 1)),
    }


def _apply_inception_c(x, p):
    b1 = conv_bn_relu(x, p["b1x1"], ksize=(1, 1))
    b7 = conv_bn_relu(x, p["b7x7_1"], ksize=(1, 1))
    b7 = conv_bn_relu(b7, p["b7x7_2"], ksize=(1, 7), padding=(0, 3))
    b7 = conv_bn_relu(b7, p["b7x7_3"], ksize=(7, 1), padding=(3, 0))
    bd = conv_bn_relu(x, p["b7x7dbl_1"], ksize=(1, 1))
    bd = conv_bn_relu(bd, p["b7x7dbl_2"], ksize=(7, 1), padding=(3, 0))
    bd = conv_bn_relu(bd, p["b7x7dbl_3"], ksize=(1, 7), padding=(0, 3))
    bd = conv_bn_relu(bd, p["b7x7dbl_4"], ksize=(7, 1), padding=(3, 0))
    bd = conv_bn_relu(bd, p["b7x7dbl_5"], ksize=(1, 7), padding=(0, 3))
    bp = pool3x3(x, stride=1, padding=1, op="avg")      # count_include_pad=False (FID)
    bp = conv_bn_relu(bp, p["pool"], ksize=(1, 1))
    return jnp.concatenate([b1, b7, bd, bp], axis=-1)


def _init_inception_d(kg, cin):
    return {
        "b3x3_1": _basic_conv_params(kg(), cin, 192, (1, 1)),
        "b3x3_2": _basic_conv_params(kg(), 192, 320, (3, 3)),
        "b7_1": _basic_conv_params(kg(), cin, 192, (1, 1)),
        "b7_2": _basic_conv_params(kg(), 192, 192, (1, 7)),
        "b7_3": _basic_conv_params(kg(), 192, 192, (7, 1)),
        "b7_4": _basic_conv_params(kg(), 192, 192, (3, 3)),
    }


def _apply_inception_d(x, p):
    b3 = conv_bn_relu(x, p["b3x3_1"], ksize=(1, 1))
    b3 = conv_bn_relu(b3, p["b3x3_2"], ksize=(3, 3), stride=(2, 2))
    b7 = conv_bn_relu(x, p["b7_1"], ksize=(1, 1))
    b7 = conv_bn_relu(b7, p["b7_2"], ksize=(1, 7), padding=(0, 3))
    b7 = conv_bn_relu(b7, p["b7_3"], ksize=(7, 1), padding=(3, 0))
    b7 = conv_bn_relu(b7, p["b7_4"], ksize=(3, 3), stride=(2, 2))
    bp = pool3x3(x, stride=2, padding=0, op="max")
    return jnp.concatenate([b3, b7, bp], axis=-1)


def _init_inception_e(kg, cin):
    return {
        "b1x1": _basic_conv_params(kg(), cin, 320, (1, 1)),
        "b3x3_1": _basic_conv_params(kg(), cin, 384, (1, 1)),
        "b3x3_2a": _basic_conv_params(kg(), 384, 384, (1, 3)),
        "b3x3_2b": _basic_conv_params(kg(), 384, 384, (3, 1)),
        "b3x3dbl_1": _basic_conv_params(kg(), cin, 448, (1, 1)),
        "b3x3dbl_2": _basic_conv_params(kg(), 448, 384, (3, 3)),
        "b3x3dbl_3a": _basic_conv_params(kg(), 384, 384, (1, 3)),
        "b3x3dbl_3b": _basic_conv_params(kg(), 384, 384, (3, 1)),
        "pool": _basic_conv_params(kg(), cin, 192, (1, 1)),
    }


def _apply_inception_e(x, p, *, pool_op):
    b1 = conv_bn_relu(x, p["b1x1"], ksize=(1, 1))
    b3 = conv_bn_relu(x, p["b3x3_1"], ksize=(1, 1))
    b3 = jnp.concatenate([
        conv_bn_relu(b3, p["b3x3_2a"], ksize=(1, 3), padding=(0, 1)),
        conv_bn_relu(b3, p["b3x3_2b"], ksize=(3, 1), padding=(1, 0)),
    ], axis=-1)
    bd = conv_bn_relu(x, p["b3x3dbl_1"], ksize=(1, 1))
    bd = conv_bn_relu(bd, p["b3x3dbl_2"], ksize=(3, 3), padding=(1, 1))
    bd = jnp.concatenate([
        conv_bn_relu(bd, p["b3x3dbl_3a"], ksize=(1, 3), padding=(0, 1)),
        conv_bn_relu(bd, p["b3x3dbl_3b"], ksize=(3, 1), padding=(1, 0)),
    ], axis=-1)
    bp = pool3x3(x, stride=1, padding=1, op=pool_op)    # avg (Mixed_7b) / max (Mixed_7c)
    bp = conv_bn_relu(bp, p["pool"], ksize=(1, 1))
    return jnp.concatenate([b1, b3, bd, bp], axis=-1)


def init_inception_v3_params(key):
    kg = _KeyGen(key)
    p = {}
    p["Conv2d_1a_3x3"] = _basic_conv_params(kg(), 3, 32, (3, 3))
    p["Conv2d_2a_3x3"] = _basic_conv_params(kg(), 32, 32, (3, 3))
    p["Conv2d_2b_3x3"] = _basic_conv_params(kg(), 32, 64, (3, 3))
    p["Conv2d_3b_1x1"] = _basic_conv_params(kg(), 64, 80, (1, 1))
    p["Conv2d_4a_3x3"] = _basic_conv_params(kg(), 80, 192, (3, 3))
    p["Mixed_5b"] = _init_inception_a(kg, 192, 32)
    p["Mixed_5c"] = _init_inception_a(kg, 256, 64)
    p["Mixed_5d"] = _init_inception_a(kg, 288, 64)
    p["Mixed_6a"] = _init_inception_b(kg, 288)
    p["Mixed_6b"] = _init_inception_c(kg, 768, 128)
    p["Mixed_6c"] = _init_inception_c(kg, 768, 160)
    p["Mixed_6d"] = _init_inception_c(kg, 768, 160)
    p["Mixed_6e"] = _init_inception_c(kg, 768, 192)
    p["Mixed_7a"] = _init_inception_d(kg, 768)
    p["Mixed_7b"] = _init_inception_e(kg, 1280)
    p["Mixed_7c"] = _init_inception_e(kg, 2048)
    return p


# ---------------------------------------------------------------------------
# InceptionV3.forward (FID variant, output_blocks=[3] by default).
# ---------------------------------------------------------------------------
def inception_v3_forward(params, x, *, output_blocks=(3,), resize_input=True,
                         normalize_input=True):
    """x: (N, 3, H, W), values in [0, 1].  Returns a list of NCHW feature maps."""
    last_needed = max(output_blocks)
    outputs = {}
    if resize_input:
        x = bilinear_resize_299(x, normalize=normalize_input)
    elif normalize_input:
        x = 2.0 * x - 1.0
    x = jnp.transpose(x, (0, 2, 3, 1))              # NCHW -> NHWC

    # Block 0
    x = conv_bn_relu(x, params["Conv2d_1a_3x3"], ksize=(3, 3), stride=(2, 2))
    x = conv_bn_relu(x, params["Conv2d_2a_3x3"], ksize=(3, 3))
    x = conv_bn_relu(x, params["Conv2d_2b_3x3"], ksize=(3, 3), padding=(1, 1))
    x = pool3x3(x, stride=2, padding=0, op="max")
    outputs[0] = x
    if last_needed >= 1:
        x = conv_bn_relu(x, params["Conv2d_3b_1x1"], ksize=(1, 1))
        x = conv_bn_relu(x, params["Conv2d_4a_3x3"], ksize=(3, 3))
        x = pool3x3(x, stride=2, padding=0, op="max")
        outputs[1] = x
    if last_needed >= 2:
        x = _apply_inception_a(x, params["Mixed_5b"])
        x = _apply_inception_a(x, params["Mixed_5c"])
        x = _apply_inception_a(x, params["Mixed_5d"])
        x = _apply_inception_b(x, params["Mixed_6a"])
        x = _apply_inception_c(x, params["Mixed_6b"])
        x = _apply_inception_c(x, params["Mixed_6c"])
        x = _apply_inception_c(x, params["Mixed_6d"])
        x = _apply_inception_c(x, params["Mixed_6e"])
        outputs[2] = x
    if last_needed >= 3:
        x = _apply_inception_d(x, params["Mixed_7a"])
        x = _apply_inception_e(x, params["Mixed_7b"], pool_op="avg")   # FIDInceptionE_1
        x = _apply_inception_e(x, params["Mixed_7c"], pool_op="max")   # FIDInceptionE_2
        x = global_avg_pool(x)
        outputs[3] = x
    return [jnp.transpose(outputs[i], (0, 3, 1, 2)) for i in sorted(output_blocks)]


# ---------------------------------------------------------------------------
# Pure-JAX references for small structural sanity checks.
# ---------------------------------------------------------------------------
def _conv_reference(x, p, ksize, stride, padding):
    KH, KW = ksize
    Cout = p["b"].shape[0]
    Cin = p["w"].shape[0] // (KH * KW)
    w = p["w"].reshape(KH, KW, Cin, Cout)
    y = jax.lax.conv_general_dilated(
        x, w, window_strides=stride,
        padding=((padding[0], padding[0]), (padding[1], padding[1])),
        dimension_numbers=("NHWC", "HWIO", "NHWC"))
    return jnp.maximum(y + p["b"], 0.0)


def _maxpool_ref(x, stride):
    return jax.lax.reduce_window(x, -jnp.inf, jax.lax.max,
                                 (1, 3, 3, 1), (1, stride, stride, 1), "VALID")


def _avgpool_cip_ref(x):
    s = jax.lax.reduce_window(x, 0.0, jax.lax.add, (1, 3, 3, 1), (1, 1, 1, 1), "SAME")
    c = jax.lax.reduce_window(jnp.ones_like(x), 0.0, jax.lax.add,
                              (1, 3, 3, 1), (1, 1, 1, 1), "SAME")
    return s / c


if __name__ == "__main__":
    key = jax.random.PRNGKey(0)
    kp, kx, kc, kq = jax.random.split(key, 4)

    # --- structural sanity checks of the Pallas building blocks -------------
    xt = jax.random.normal(kc, (2, 11, 13, 5), jnp.float32)
    pt = _basic_conv_params(jax.random.PRNGKey(42), 5, 32, (3, 3))
    got = conv_bn_relu(xt, pt, ksize=(3, 3), stride=(2, 2), padding=(1, 1))
    ref = _conv_reference(xt, pt, (3, 3), (2, 2), (1, 1))
    np.testing.assert_allclose(np.asarray(got), np.asarray(ref), rtol=5e-2, atol=5e-2)

    xp = jax.random.normal(kq, (2, 11, 13, 192), jnp.float32)
    np.testing.assert_allclose(
        np.asarray(pool3x3(xp, stride=2, padding=0, op="max")),
        np.asarray(_maxpool_ref(xp, 2)), rtol=1e-5, atol=1e-5)
    np.testing.assert_allclose(
        np.asarray(pool3x3(xp, stride=1, padding=1, op="avg")),
        np.asarray(_avgpool_cip_ref(xp)), rtol=1e-5, atol=1e-5)

    # --- full InceptionV3 (FID) forward --------------------------------------
    params = init_inception_v3_params(kp)
    x = jax.random.uniform(kx, (2, 3, 16, 16), jnp.float32)   # B x 3 x H x W in [0,1]
    feats = jax.jit(inception_v3_forward)(params, x)
    feats = [jax.block_until_ready(f) for f in feats]
    assert len(feats) == 1 and feats[0].shape == (2, 2048, 1, 1)
    assert bool(jnp.all(jnp.isfinite(feats[0])))
    print("KERNEL_OK")
</pallas_src>

<mosaic_0001>
module attributes {stable_mosaic.version = 11 : i64} {
  func.func @_mm_bias_act_kernel(%arg0: i32, %arg1: i32, %arg2: i32, %arg3: memref<88x128xf32, #tpu.memory_space<vmem>>, %arg4: memref<128x128xf32, #tpu.memory_space<vmem>>, %arg5: memref<1x128xf32, #tpu.memory_space<vmem>>, %arg6: memref<88x128xf32, #tpu.memory_space<vmem>>, %arg7: memref<88x128xf32, #tpu.memory_space<vmem>>) attributes {dimension_semantics = [#tpu.dimension_semantics<parallel>, #tpu.dimension_semantics<parallel>, #tpu.dimension_semantics<arbitrary>], iteration_bounds = array<i64: 1, 1, 1>, scalar_prefetch = 0 : i64, scratch_operands = 1 : i64, tpu.core_type = #tpu.core_type<tc>, window_params = [{transform_indices = @transform_0, window_bounds = array<i64: 88, 128>}, {transform_indices = @transform_1, window_bounds = array<i64: 128, 128>}, {transform_indices = @transform_2, window_bounds = array<i64: 1, 128>}, {transform_indices = @transform_3, window_bounds = array<i64: 88, 128>}]} {
    %c0_i32 = arith.constant 0 : i32
    %0 = arith.cmpi eq, %arg2, %c0_i32 : i32
    %1 = arith.extui %0 : i1 to i32
    %c0_i32_0 = arith.constant 0 : i32
    %2 = arith.cmpi ne, %1, %c0_i32_0 : i32
    scf.if %2 {
      %cst_10 = arith.constant 0.000000e+00 : f32
      %12 = vector.broadcast %cst_10 : f32 to vector<88x128xf32>
      %c0_11 = arith.constant 0 : index
      %c0_12 = arith.constant 0 : index
      %13 = vector.load %arg7[%c0_11, %c0_12] : memref<88x128xf32, #tpu.memory_space<vmem>>, vector<88x128xf32>
      tpu.vector_store %arg7[%c0_11, %c0_12], %12 {strides = array<i32>} : memref<88x128xf32, #tpu.memory_space<vmem>>, vector<88x128xf32>,
    } else {
    }
    %c0 = arith.constant 0 : index
    %c0_1 = arith.constant 0 : index
    %3 = vector.load %arg7[%c0, %c0_1] : memref<88x128xf32, #tpu.memory_space<vmem>>, vector<88x128xf32>
    %c0_2 = arith.constant 0 : index
    %c0_3 = arith.constant 0 : index
    %4 = vector.load %arg3[%c0_2, %c0_3] : memref<88x128xf32, #tpu.memory_space<vmem>>, vector<88x128xf32>
    %c0_4 = arith.constant 0 : index
    %c0_5 = arith.constant 0 : index
    %5 = vector.load %arg4[%c0_4, %c0_5] : memref<128x128xf32, #tpu.memory_space<vmem>>, vector<128x128xf32>
    %cst = arith.constant dense<0.000000e+00> : vector<88x128xf32>
    %6 = tpu.matmul %4, %5, %cst {dimension_numbers = #tpu.dot_dimension_numbers<[1], [0], [0], [1], [0, 0, 1, 1], [], []>} : vector<88x128xf32>, vector<128x128xf32>, vector<88x128xf32> -> vector<88x128xf32>
    %7 = arith.addf %3, %6 : vector<88x128xf32>
    %c0_6 = arith.constant 0 : index
    %c0_7 = arith.constant 0 : index
    %8 = vector.load %arg7[%c0_6, %c0_7] : memref<88x128xf32, #tpu.memory_space<vmem>>, vector<88x128xf32>
    tpu.vector_store %arg7[%c0_6, %c0_7], %7 {strides = array<i32>} : memref<88x128xf32, #tpu.memory_space<vmem>>, vector<88x128xf32>,
    %c0_i32_8 = arith.constant 0 : i32
    %9 = arith.cmpi eq, %arg2, %c0_i32_8 : i32
    %10 = arith.extui %9 : i1 to i32
    %c0_i32_9 = arith.constant 0 : i32
    %11 = arith.cmpi ne, %10, %c0_i32_9 : i32
    scf.if %11 {
      %c0_10 = arith.constant 0 : index
      %c0_11 = arith.constant 0 : index
      %12 = vector.load %arg7[%c0_10, %c0_11] : memref<88x128xf32, #tpu.memory_space<vmem>>, vector<88x128xf32>
      %c0_12 = arith.constant 0 : index
      %c0_13 = arith.constant 0 : index
      %13 = vector.load %arg5[%c0_12, %c0_13] : memref<1x128xf32, #tpu.memory_space<vmem>>, vector<1x128xf32>
      %14 = vector.broadcast %13 : vector<1x128xf32> to vector<88x128xf32>
      %15 = arith.addf %12, %14 : vector<88x128xf32>
      %cst_14 = arith.constant 0.000000e+00 : f32
      %16 = vector.broadcast %cst_14 : f32 to vector<88x128xf32>
      %17 = arith.maximumf %15, %16 : vector<88x128xf32>
      %c0_15 = arith.constant 0 : index
      %c0_16 = arith.constant 0 : index
      %18 = vector.load %arg6[%c0_15, %c0_16] : memref<88x128xf32, #tpu.memory_space<vmem>>, vector<88x128xf32>
      tpu.vector_store %arg6[%c0_15, %c0_16], %17 {strides = array<i32>} : memref<88x128xf32, #tpu.memory_space<vmem>>, vector<88x128xf32>,
    } else {
    }
    return
  }
  func.func @transform_0(%arg0: i32, %arg1: i32, %arg2: i32) -> (i32, i32) {
    %c0_i32 = arith.constant 0 : i32
    return %arg0, %arg2 : i32, i32
  }
  func.func @transform_1(%arg0: i32, %arg1: i32, %arg2: i32) -> (i32, i32) {
    %c0_i32 = arith.constant 0 : i32
    return %arg2, %arg1 : i32, i32
  }
  func.func @transform_2(%arg0: i32, %arg1: i32, %arg2: i32) -> (i32, i32) {
    %c0_i32 = arith.constant 0 : i32
    %c0_i32_0 = arith.constant 0 : i32
    return %c0_i32, %arg1 : i32, i32
  }
  func.func @transform_3(%arg0: i32, %arg1: i32, %arg2: i32) -> (i32, i32) {
    %c0_i32 = arith.constant 0 : i32
    return %arg0, %arg1 : i32, i32
  }
}

</mosaic_0001>

<bundles_post_ra>
// kernel: tpu_custom_call.1
= control target key start
LH: loop header
LB: loop body
LE: loop exit
PB: predicated region body
PF: predicated region fallthrough
CT: control target
= control target key end

     0   :  { %8 = vsyncpa [#allocation4], 0  ;;  %s621_s0 = inlined_call_operand.hbm [shape: f32[88,128], index: 0, kind: input, shape index: {}]   ;;  %s622_s1 = inlined_call_operand.hbm [shape: f32[128,128], index: 1, kind: input, shape index: {}]   ;;  %s623_s2 = inlined_call_operand.vmem [shape: f32[1,128], index: 2, kind: input, shape index: {}]   ;;  %s624_s3 = inlined_call_operand.hbm [shape: f32[88,128], index: 3, kind: output, shape index: {}]  }
   0x1   :  { %9 = vsyncpa [#allocation7], 0 }
   0x2   :  { %10 = vsyncpa [#allocation5], 0  ;;  %s523_s12 = smov [#allocation3]   ;;  %s451_s16 = scalar_lea.hbm %s621_s0, 1408 }
   0x3   :  { %s16_s13 = sshll.u32 %s523_s12, 4  ;;  %p452_p0 = scmp.ne.s32.totalorder %s621_s0, %s451_s16  ;;  %s17_s13 = int_to_ptr.vmem [resolvable:$true] %s16_s13 }
   0x4   :  { %p455_p1 = scmp.lt.u32.totalorder %s451_s16, %s621_s0 }
   0x6   :  { %p457_p2 = pnand %p455_p1, %p452_p0 }
   0x8   :  { %460 = shalt.err (!%p457_p2)
}
   0x9   :  { %s461_s21 = scalar_lea.vmem %s17_s13, 1408  ;;  %p466_p4 = scmp.lt.s32.totalorder %s17_s13, %s17_s13 }
   0xa   :  { %p462_p3 = scmp.ne.s32.totalorder %s17_s13, %s461_s21  ;;  %p467_p5 = scmp.lt.s32.totalorder %s461_s21, %s461_s21 }
   0xc   :  { %p468_p6 = por %p467_p5, %p466_p4 }
   0xe   :  { %p469_p7 = pnand %p468_p6, %p462_p3 }
  0x10   :  { %472 = shalt.err (!%p469_p7)
}
  0x11   :  { %s524_s22 = smov 128   ;;  %s525_s23 = smov 8  }
  0x12   :  { %22 = dma.hbm_to_vmem [thread:$0]  %s621_s0, 1408, %s17_s13, [#allocation4], %s524_s22, %s524_s22, %s525_s23  }
  0x13   :  { %s526_s26 = smov [#allocation6]   ;;  %s473_s30 = scalar_lea.hbm %s622_s1, 2048 }
  0x14   :  { %s28_s27 = sshll.u32 %s526_s26, 4  ;;  %p474_p8 = scmp.ne.s32.totalorder %s622_s1, %s473_s30  ;;  %s29_s27 = int_to_ptr.vmem [resolvable:$true] %s28_s27 }
  0x15   :  { %p477_p9 = scmp.lt.u32.totalorder %s473_s30, %s622_s1 }
  0x17   :  { %p479_p10 = pnand %p477_p9, %p474_p8 }
  0x19   :  { %482 = shalt.err (!%p479_p10)
}
  0x1a   :  { %s483_s8 = scalar_lea.vmem %s29_s27, 2048  ;;  %p488_p12 = scmp.lt.s32.totalorder %s29_s27, %s29_s27 }
  0x1b   :  { %p484_p11 = scmp.ne.s32.totalorder %s29_s27, %s483_s8  ;;  %p489_p13 = scmp.lt.s32.totalorder %s483_s8, %s483_s8 }
  0x1d   :  { %p490_p0 = por %p489_p13, %p488_p12 }
  0x1f   :  { %p491_p1 = pnand %p490_p0, %p484_p11 }
  0x21   :  { %494 = shalt.err (!%p491_p1)
}
  0x22   :  { %34 = dma.hbm_to_vmem [thread:$0]  %s622_s1, 2048, %s29_s27, [#allocation7], %s524_s22, %s524_s22, %s525_s23  }
  0x23   :  { %517 = dma.done.wait [#allocation4], 1408  }
  0x24   :  { %518 = vsyncadd [#allocation4], 4294965888 }
  0x25   :  { %519 = dma.done.wait [#allocation7], 2048  }
  0x26   :  { %520 = vsyncadd [#allocation7], 4294965248  ;;  %v527_v0 = vmov 0.0|0.0   ;;  %vm528_vm0 = vmmov 0   ;;  %v529_v1 = vmov 0.0   ;;  %v80_v2 = vld [vmem:[#allocation6] sm:$0xff] }
  0x27   :  { %403 = vmatprep.subr.bf16.mxu0 %v527_v0  ;;  %427 = vmatprep.subr.bf16.mxu1 %v527_v0  ;;  %v81_v3 = vld [vmem:[#allocation6 + $0x8] sm:$0xff]  ;;  %v82_v4 = vld [vmem:[#allocation6 + $0x10] sm:$0xff]  ;;  %v83_v6 = vld [vmem:[#allocation6 + $0x18] sm:$0xff] }
  0x28   :  { %370 = vmatprep.mubr.msk.f32.mxu0 %vm528_vm0, %v529_v1  ;;  %388 = vmatprep.mubr.msk.f32.mxu1 %vm528_vm0, %v529_v1  ;;  %v404_v5 = vpack.c.bf16 %v81_v3, %v80_v2  ;;  %v407_v7 = vpack.c.bf16 %v83_v6, %v82_v4  ;;  %v84_v8 = vld [vmem:[#allocation6 + $0x20] sm:$0xff]  ;;  %v85_v9 = vld [vmem:[#allocation6 + $0x28] sm:$0xff]  ;;  %v86_v11 = vld [vmem:[#allocation6 + $0x30] sm:$0xff] }
  0x29   :  { %v410_v10 = vpack.c.bf16 %v85_v9, %v84_v8  ;;  %v87_v12 = vld [vmem:[#allocation6 + $0x38] sm:$0xff]  ;;  %v88_v14 = vld [vmem:[#allocation6 + $0x40] sm:$0xff]  ;;  %v89_v15 = vld [vmem:[#allocation6 + $0x48] sm:$0xff] }
  0x2a   :  { %405 = vmatpush3.bf16.msra.mxu0 %v404_v5  ;;  %435 = vmatpush3.bf16.msra.mxu1 %v404_v5  ;;  %v413_v13 = vpack.c.bf16 %v87_v12, %v86_v11  ;;  %v416_v16 = vpack.c.bf16 %v89_v15, %v88_v14  ;;  %v90_v17 = vld [vmem:[#allocation6 + $0x50] sm:$0xff]  ;;  %v91_v18 = vld [vmem:[#allocation6 + $0x58] sm:$0xff]  ;;  %v92_v20 = vld [vmem:[#allocation6 + $0x60] sm:$0xff] }
  0x2b   :  { %406 = vmatprep.subr.bf16.mxu0 %v527_v0  ;;  %428 = vmatprep.subr.bf16.mxu1 %v527_v0  ;;  %v419_v19 = vpack.c.bf16 %v91_v18, %v90_v17  ;;  %v93_v21 = vld [vmem:[#allocation6 + $0x68] sm:$0xff]  ;;  %v94_v23 = vld [vmem:[#allocation6 + $0x70] sm:$0xff]  ;;  %v95_v24 = vld [vmem:[#allocation6 + $0x78] sm:$0xff] }
  0x2c   :  { %v422_v22 = vpack.c.bf16 %v93_v21, %v92_v20  ;;  %v425_v25 = vpack.c.bf16 %v95_v24, %v94_v23  ;;  %v69_v26 = vld [vmem:[#allocation3] sm:$0xff]  ;;  %v75_v27 = vld [vmem:[#allocation3 + $0x30] sm:$0xff]  ;;  %v70_v28 = vld [vmem:[#allocation3 + $0x8] sm:$0xff] }
  0x2d   :  { %v76_v29 = vld [vmem:[#allocation3 + $0x38] sm:$0xff]  ;;  %v71_v30 = vld [vmem:[#allocation3 + $0x10] sm:$0xff]  ;;  %v77_v31 = vld [vmem:[#allocation3 + $0x40] sm:$0xff] }
  0x2e   :  { %408 = vmatpush3.bf16.msra.mxu0 %v407_v7  ;;  %436 = vmatpush3.bf16.msra.mxu1 %v407_v7  ;;  %v72_v32 = vld [vmem:[#allocation3 + $0x18] sm:$0xff]  ;;  %v78_v33 = vld [vmem:[#allocation3 + $0x48] sm:$0xff]  ;;  %v73_v34 = vld [vmem:[#allocation3 + $0x20] sm:$0xff] }
  0x2f   :  { %409 = vmatprep.subr.bf16.mxu0 %v527_v0  ;;  %429 = vmatprep.subr.bf16.mxu1 %v527_v0  ;;  %v79_v35 = vld [vmem:[#allocation3 + $0x50] sm:$0xff]  ;;  %v74_v36 = vld [vmem:[#allocation3 + $0x28] sm:$0xff]  ;;  %v310_v37 = vld [vmem:[%s623_s2] ss:$0 sm:$0xff]  ;;  %s530_s2 = smov [#allocation8]  }
  0x30   :  { %s297_s11 = sshll.u32 %s530_s2, 4  ;;  %s298_s11 = int_to_ptr.vmem [resolvable:$true] %s297_s11 }
  0x31   :  { %s495_s12 = scalar_lea.vmem %s298_s11, 1408  ;;  %p500_p3 = scmp.lt.s32.totalorder %s298_s11, %s298_s11 }
  0x32   :  { %411 = vmatpush3.bf16.msra.mxu0 %v410_v10  ;;  %437 = vmatpush3.bf16.msra.mxu1 %v410_v10  ;;  %p496_p2 = scmp.ne.s32.totalorder %s298_s11, %s495_s12  ;;  %p501_p4 = scmp.lt.s32.totalorder %s495_s12, %s495_s12 }
  0x33   :  { %412 = vmatprep.subr.bf16.mxu0 %v527_v0  ;;  %430 = vmatprep.subr.bf16.mxu1 %v527_v0 }
  0x34   :  { %p502_p5 = por %p501_p4, %p500_p3 }
  0x36   :  { %414 = vmatpush3.bf16.msra.mxu0 %v413_v13  ;;  %438 = vmatpush3.bf16.msra.mxu1 %v413_v13  ;;  %p503_p6 = pnand %p502_p5, %p496_p2 }
  0x37   :  { %415 = vmatprep.subr.bf16.mxu0 %v527_v0  ;;  %431 = vmatprep.subr.bf16.mxu1 %v527_v0 }
  0x3a   :  { %417 = vmatpush3.bf16.msra.mxu0 %v416_v16  ;;  %439 = vmatpush3.bf16.msra.mxu1 %v416_v16 }
  0x3b   :  { %418 = vmatprep.subr.bf16.mxu0 %v527_v0  ;;  %432 = vmatprep.subr.bf16.mxu1 %v527_v0 }
  0x3e   :  { %420 = vmatpush3.bf16.msra.mxu0 %v419_v19  ;;  %440 = vmatpush3.bf16.msra.mxu1 %v419_v19 }
  0x3f   :  { %421 = vmatprep.subr.bf16.mxu0 %v527_v0  ;;  %433 = vmatprep.subr.bf16.mxu1 %v527_v0 }
  0x42   :  { %423 = vmatpush3.bf16.msra.mxu0 %v422_v22  ;;  %441 = vmatpush3.bf16.msra.mxu1 %v422_v22 }
  0x43   :  { %424 = vmatprep.subr.bf16.mxu0 %v527_v0  ;;  %434 = vmatprep.subr.bf16.mxu1 %v527_v0 }
  0x46   :  { %426 = vmatpush3.bf16.msra.mxu0 %v425_v25  ;;  %442 = vmatpush3.bf16.msra.mxu1 %v425_v25 }
  0x49   :  { %371 = vmatmul.mubr.f32.vlgmr.msra.gmra.mrb[0].mxu0 %v69_v26  ;;  %389 = vmatmul.mubr.f32.vlgmr.msra.gmra.mrb[0].mxu1 %v75_v27 }
  0x4a   :  { %373 = vmatprep.mubr.msk.f32.mxu0 %vm528_vm0, %v529_v1  ;;  %391 = vmatprep.mubr.msk.f32.mxu1 %vm528_vm0, %v529_v1 }
  0x4d   :  { %374 = vmatmul.mubr.f32.gmra.mrb[2].mxu0 %v70_v28  ;;  %392 = vmatmul.mubr.f32.gmra.mrb[2].mxu1 %v76_v29 }
  0x4e   :  { %376 = vmatprep.mubr.msk.f32.mxu0 %vm528_vm0, %v529_v1  ;;  %394 = vmatprep.mubr.msk.f32.mxu1 %vm528_vm0, %v529_v1 }
  0x51   :  { %377 = vmatmul.mubr.f32.gmra.mrb[4].mxu0 %v71_v30  ;;  %395 = vmatmul.mubr.f32.gmra.mrb[4].mxu1 %v77_v31 }
  0x52   :  { %379 = vmatprep.mubr.msk.f32.mxu0 %vm528_vm0, %v529_v1  ;;  %397 = vmatprep.mubr.msk.f32.mxu1 %vm528_vm0, %v529_v1 }
  0x55   :  { %380 = vmatmul.mubr.f32.gmra.mrb[6].mxu0 %v72_v32  ;;  %398 = vmatmul.mubr.f32.gmra.mrb[6].mxu1 %v78_v33 }
  0x56   :  { %382 = vmatprep.mubr.msk.f32.mxu0 %vm528_vm0, %v529_v1  ;;  %400 = vmatprep.mubr.msk.f32.mxu1 %vm528_vm0, %v529_v1 }
  0x59   :  { %383 = vmatmul.mubr.f32.gmra.mrb[8].mxu0 %v73_v34  ;;  %401 = vmatmul.mubr.f32.gmra.mrb[8].mxu1 %v79_v35 }
  0x5a   :  { %385 = vmatprep.mubr.msk.f32.mxu0 %vm528_vm0, %v529_v1 }
  0x5d   :  { %386 = vmatmul.mubr.f32.gmra.mrb[10].mxu0 %v74_v36 }
 0x11c   :  { %v162_v38 = vpop.f32.mrb[0].mxu0  ;;  %v192_v39 = vpop.f32.mrb[0].mxu1 }
 0x11d   :  { %v259_v40 = vadd.f32 %v310_v37, %v162_v38  ;;  %v372_v41 = vpop.f32.mrb[1].mxu0  ;;  %v265_v42 = vadd.f32 %v310_v37, %v192_v39  ;;  %v390_v43 = vpop.f32.mrb[1].mxu1 }
 0x11f   :  { %v270_v44 = vmax.f32 %v259_v40, 0.0  ;;  %v276_v45 = vmax.f32 %v265_v42, 0.0 }
 0x120   :  { %v167_v46 = vpop.f32.mrb[2].mxu0  ;;  %v197_v47 = vpop.f32.mrb[2].mxu1 }
 0x121   :  { %281 = vst [vmem:[#allocation8] sm:$0xff] %v270_v44  ;;  %287 = vst [vmem:[#allocation8 + $0x30] sm:$0xff] %v276_v45  ;;  %v260_v48 = vadd.f32 %v310_v37, %v167_v46  ;;  %v375_v49 = vpop.f32.mrb[3].mxu0  ;;  %v266_v50 = vadd.f32 %v310_v37, %v197_v47  ;;  %v393_v51 = vpop.f32.mrb[3].mxu1 }
 0x123   :  { %v271_v52 = vmax.f32 %v260_v48, 0.0  ;;  %v277_v53 = vmax.f32 %v266_v50, 0.0 }
 0x124   :  { %v172_v54 = vpop.f32.mrb[4].mxu0  ;;  %v202_v55 = vpop.f32.mrb[4].mxu1 }
 0x125   :  { %282 = vst [vmem:[#allocation8 + $0x8] sm:$0xff] %v271_v52  ;;  %288 = vst [vmem:[#allocation8 + $0x38] sm:$0xff] %v277_v53  ;;  %v261_v56 = vadd.f32 %v310_v37, %v172_v54  ;;  %v378_v57 = vpop.f32.mrb[5].mxu0  ;;  %v267_v58 = vadd.f32 %v310_v37, %v202_v55  ;;  %v396_v59 = vpop.f32.mrb[5].mxu1 }
 0x127   :  { %v272_v60 = vmax.f32 %v261_v56, 0.0  ;;  %v278_v61 = vmax.f32 %v267_v58, 0.0 }
 0x128   :  { %v177_v62 = vpop.f32.mrb[6].mxu0  ;;  %v207_v63 = vpop.f32.mrb[6].mxu1 }
 0x129   :  { %283 = vst [vmem:[#allocation8 + $0x10] sm:$0xff] %v272_v60  ;;  %289 = vst [vmem:[#allocation8 + $0x40] sm:$0xff] %v278_v61  ;;  %v262_v0 = vadd.f32 %v310_v37, %v177_v62  ;;  %v381_v1 = vpop.f32.mrb[7].mxu0  ;;  %v268_v2 = vadd.f32 %v310_v37, %v207_v63  ;;  %v399_v3 = vpop.f32.mrb[7].mxu1 }
 0x12b   :  { %v273_v4 = vmax.f32 %v262_v0, 0.0  ;;  %v279_v5 = vmax.f32 %v268_v2, 0.0 }
 0x12c   :  { %v182_v6 = vpop.f32.mrb[8].mxu0  ;;  %v212_v7 = vpop.f32.mrb[8].mxu1 }
 0x12d   :  { %284 = vst [vmem:[#allocation8 + $0x18] sm:$0xff] %v273_v4  ;;  %290 = vst [vmem:[#allocation8 + $0x48] sm:$0xff] %v279_v5  ;;  %v263_v8 = vadd.f32 %v310_v37, %v182_v6  ;;  %v384_v9 = vpop.f32.mrb[9].mxu0  ;;  %v269_v10 = vadd.f32 %v310_v37, %v212_v7  ;;  %v402_v11 = vpop.f32.mrb[9].mxu1 }
 0x12f   :  { %v274_v12 = vmax.f32 %v263_v8, 0.0  ;;  %v280_v13 = vmax.f32 %v269_v10, 0.0 }
 0x130   :  { %v187_v14 = vpop.f32.mrb[10].mxu0 }
 0x131   :  { %285 = vst [vmem:[#allocation8 + $0x20] sm:$0xff] %v274_v12  ;;  %291 = vst [vmem:[#allocation8 + $0x50] sm:$0xff] %v280_v13  ;;  %v264_v15 = vadd.f32 %v310_v37, %v187_v14  ;;  %v387_v16 = vpop.f32.mrb[11].mxu0 }
 0x133   :  { %v275_v17 = vmax.f32 %v264_v15, 0.0 }
 0x135   :  { %286 = vst [vmem:[#allocation8 + $0x28] sm:$0xff] %v275_v17 }
 0x136   :  { %506 = shalt.err (!%p503_p6)
}
 0x137   :  { %s507_s15 = scalar_lea.hbm %s624_s3, 1408 }
 0x138   :  { %p508_p7 = scmp.ne.s32.totalorder %s624_s3, %s507_s15  ;;  %p511_p8 = scmp.lt.u32.totalorder %s507_s15, %s624_s3 }
 0x13a   :  { %p513_p9 = pnand %p511_p8, %p508_p7 }
 0x13c   :  { %516 = shalt.err (!%p513_p9)
}
 0x13d   :  { %303 = dma.vmem_to_hbm [thread:$0]  %s298_s11, 1408, %s624_s3, [#allocation5], %s524_s22, %s524_s22, %s525_s23  }
 0x13e   :  { %521 = dma.done.wait [#allocation5], 1408  }
 0x13f   :  { %522 = vsyncadd [#allocation5], 4294965888 }
 0x140   :  { %307 = vsyncpa [#allocation4], 1 }
 0x141   :  { %308 = vsyncpa [#allocation7], 1 }
 0x142   :  { %309 = vsyncpa [#allocation5], 1 }

</bundles_post_ra>
